<compile_context>
chip_gen: v7x
topology: tpu7x:2x2x1
jax: 0.10.0
libtpu: 0.0.40
codegen_flags: <defaults>
</compile_context>

<pallas_src>
import functools

import jax
import jax.numpy as jnp
from jax import lax
from jax.experimental import pallas as pl
from jax.experimental.pallas import tpu as pltpu


def _round_up(n, m):
    return ((n + m - 1) // m) * m


def _mlp_kernel(xT_ref, w1_ref, b1_ref, w2t_ref, b2_ref, o_ref, *, d_out):
    # xT_ref : (D_in, TB)   batch on lanes
    # w1_ref : (D_h, D_in)  PyTorch layout, VMEM-resident across the whole grid
    # b1_ref : (D_h, 1), w2t_ref: (D_h, D_out), b2_ref: (D_out, 1)
    # o_ref  : (D_out, TB)  lane-dense output tile
    h = jnp.dot(w1_ref[...], xT_ref[...],
                preferred_element_type=jnp.float32) + b1_ref[...]     # (D_h, TB) MXU
    h = jnp.tanh(h)                                                   # EUP

    if d_out == 1:
        # N=1 second layer: VPU multiply + XLU sublane-reduce — off the MXU path,
        # and it naturally yields a lane-dense (1, TB) row.
        y = jnp.sum(h * w2t_ref[...], axis=0, keepdims=True) + b2_ref[...]
    else:
        # General D_out: contract the hidden (sublane) dim on the MXU.
        y = lax.dot_general(w2t_ref[...], h,
                            dimension_numbers=(((0,), (0,)), ((), ())),
                            preferred_element_type=jnp.float32) + b2_ref[...]
    o_ref[...] = y.astype(o_ref.dtype)


def dynamic_nn_forward(s, w1, b1, w2, b2):
    """Pallas equivalent of dynamic_NN.forward.

    Weights are in native PyTorch nn.Linear layout:
      w1: (hidden, input), b1: (hidden,), w2: (output, hidden), b2: (output,).
    """
    D_h, D_in = w1.shape
    D_out = w2.shape[0]

    x = jnp.reshape(s, (-1, D_in)).astype(jnp.float32)       # s.view(-1, input): (B, D_in)
    B = x.shape[0]

    # ---- wrapper-side layout plumbing (done once, outside the kernel) ----
    TB = min(512, _round_up(B, 128))                         # lane-dense batch tile
    B_pad = _round_up(B, TB)
    xT = jnp.transpose(x)                                    # (D_in, B): batch -> lanes
    if B_pad != B:
        xT = jnp.pad(xT, ((0, 0), (0, B_pad - B)))           # padded lanes sliced off below

    w1f = w1.astype(jnp.float32)                             # (D_h, D_in)
    b1c = jnp.reshape(b1, (D_h, 1)).astype(jnp.float32)      # broadcasts over lanes
    w2t = jnp.transpose(w2).astype(jnp.float32)              # (D_h, D_out)
    b2c = jnp.reshape(b2, (D_out, 1)).astype(jnp.float32)

    grid = (B_pad // TB,)

    out_T = pl.pallas_call(
        functools.partial(_mlp_kernel, d_out=D_out),
        out_shape=jax.ShapeDtypeStruct((D_out, B_pad), jnp.float32),
        grid=grid,
        in_specs=[
            pl.BlockSpec((D_in, TB), lambda i: (0, i)),       # x tile marches with grid
            pl.BlockSpec((D_h, D_in), lambda i: (0, 0)),      # weights stay VMEM-resident
            pl.BlockSpec((D_h, 1), lambda i: (0, 0)),
            pl.BlockSpec((D_h, D_out), lambda i: (0, 0)),
            pl.BlockSpec((D_out, 1), lambda i: (0, 0)),
        ],
        out_specs=pl.BlockSpec((D_out, TB), lambda i: (0, i)),
        compiler_params=pltpu.CompilerParams(
            dimension_semantics=("parallel",)),               # shard batch tiles across TCs
    )(xT, w1f, b1c, w2t, b2c)

    y = jnp.transpose(out_T[:, :B])                           # (B, D_out)
    return jnp.squeeze(y)                                     # torch.squeeze


if __name__ == "__main__":
    # Module hyperparameters consistent with the forward pass.
    INPUT, HIDDEN, OUTPUT = 16, 32, 1

    key = jax.random.PRNGKey(0)
    k_s, k_w1, k_b1, k_w2, k_b2 = jax.random.split(key, 5)

    # Example input: s of shape (2, 4, 16) -> view(-1, 16) gives (8, 16).
    s = jax.random.normal(k_s, (2, 4, INPUT), dtype=jnp.float32)

    # Deterministic synthetic parameters in PyTorch nn.Linear layout.
    w1 = jax.random.normal(k_w1, (HIDDEN, INPUT), dtype=jnp.float32) * 0.1   # (hidden, input)
    b1 = jax.random.normal(k_b1, (HIDDEN,), dtype=jnp.float32) * 0.1
    w2 = jax.random.normal(k_w2, (OUTPUT, HIDDEN), dtype=jnp.float32) * 0.1  # (output, hidden)
    b2 = jax.random.normal(k_b2, (OUTPUT,), dtype=jnp.float32) * 0.1

    out = dynamic_nn_forward(s, w1, b1, w2, b2)
    out = jax.block_until_ready(out)

    # Pure-JAX reference of the same semantics (PyTorch-layout weights).
    x_ref = jnp.reshape(s, (-1, INPUT))
    ref = jnp.squeeze(jnp.tanh(x_ref @ w1.T + b1) @ w2.T + b2)
    assert out.shape == ref.shape == (8,), (out.shape, ref.shape)
    assert jnp.allclose(out, ref, atol=1e-5, rtol=1e-5)

    print("KERNEL_OK")
</pallas_src>

<mosaic_0001>
module attributes {stable_mosaic.version = 11 : i64} {
  func.func @_mlp_kernel(%arg0: i32, %arg1: memref<16x128xf32, #tpu.memory_space<vmem>>, %arg2: memref<32x16xf32, #tpu.memory_space<vmem>>, %arg3: memref<32x1xf32, #tpu.memory_space<vmem>>, %arg4: memref<32x1xf32, #tpu.memory_space<vmem>>, %arg5: memref<1x1xf32, #tpu.memory_space<vmem>>, %arg6: memref<1x128xf32, #tpu.memory_space<vmem>>) attributes {dimension_semantics = [#tpu.dimension_semantics<parallel>], iteration_bounds = array<i64: 1>, scalar_prefetch = 0 : i64, scratch_operands = 0 : i64, tpu.core_type = #tpu.core_type<tc>, window_params = [{transform_indices = @transform_0, window_bounds = array<i64: 16, 128>}, {pipeline_mode = #tpu.pipeline_mode<synchronous>, transform_indices = @transform_1, window_bounds = array<i64: 32, 16>}, {pipeline_mode = #tpu.pipeline_mode<synchronous>, transform_indices = @transform_2, window_bounds = array<i64: 32, 1>}, {pipeline_mode = #tpu.pipeline_mode<synchronous>, transform_indices = @transform_3, window_bounds = array<i64: 32, 1>}, {pipeline_mode = #tpu.pipeline_mode<synchronous>, transform_indices = @transform_4, window_bounds = array<i64: 1, 1>}, {transform_indices = @transform_5, window_bounds = array<i64: 1, 128>}]} {
    %c0 = arith.constant 0 : index
    %c0_0 = arith.constant 0 : index
    %0 = vector.load %arg2[%c0, %c0_0] : memref<32x16xf32, #tpu.memory_space<vmem>>, vector<32x16xf32>
    %c0_1 = arith.constant 0 : index
    %c0_2 = arith.constant 0 : index
    %1 = vector.load %arg1[%c0_1, %c0_2] : memref<16x128xf32, #tpu.memory_space<vmem>>, vector<16x128xf32>
    %cst = arith.constant dense<0.000000e+00> : vector<32x128xf32>
    %2 = tpu.matmul %0, %1, %cst {dimension_numbers = #tpu.dot_dimension_numbers<[1], [0], [0], [1], [0, 0, 1, 1], [], []>} : vector<32x16xf32>, vector<16x128xf32>, vector<32x128xf32> -> vector<32x128xf32>
    %c0_3 = arith.constant 0 : index
    %c0_4 = arith.constant 0 : index
    %3 = vector.load %arg3[%c0_3, %c0_4] : memref<32x1xf32, #tpu.memory_space<vmem>>, vector<32x1xf32>
    %4 = vector.broadcast %3 : vector<32x1xf32> to vector<32x128xf32>
    %5 = arith.addf %2, %4 : vector<32x128xf32>
    %6 = math.tanh %5 : vector<32x128xf32>
    %c0_5 = arith.constant 0 : index
    %c0_6 = arith.constant 0 : index
    %7 = vector.load %arg4[%c0_5, %c0_6] : memref<32x1xf32, #tpu.memory_space<vmem>>, vector<32x1xf32>
    %8 = vector.broadcast %7 : vector<32x1xf32> to vector<32x128xf32>
    %9 = arith.mulf %6, %8 : vector<32x128xf32>
    %cst_7 = arith.constant dense<0.000000e+00> : vector<128xf32>
    %10 = vector.multi_reduction <add>, %9, %cst_7 [0] : vector<32x128xf32> to vector<128xf32>
    %11 = vector.shape_cast %10 : vector<128xf32> to vector<1x128xf32>
    %c0_8 = arith.constant 0 : index
    %c0_9 = arith.constant 0 : index
    %12 = vector.load %arg5[%c0_8, %c0_9] : memref<1x1xf32, #tpu.memory_space<vmem>>, vector<1x1xf32>
    %13 = vector.broadcast %12 : vector<1x1xf32> to vector<1x128xf32>
    %14 = arith.addf %11, %13 : vector<1x128xf32>
    %c0_10 = arith.constant 0 : index
    %c0_11 = arith.constant 0 : index
    %15 = vector.load %arg6[%c0_10, %c0_11] : memref<1x128xf32, #tpu.memory_space<vmem>>, vector<1x128xf32>
    tpu.vector_store %arg6[%c0_10, %c0_11], %14 {strides = array<i32>} : memref<1x128xf32, #tpu.memory_space<vmem>>, vector<1x128xf32>,
    return
  }
  func.func @transform_0(%arg0: i32) -> (i32, i32) {
    %c0_i32 = arith.constant 0 : i32
    %c0_i32_0 = arith.constant 0 : i32
    return %c0_i32, %arg0 : i32, i32
  }
  func.func @transform_1(%arg0: i32) -> (i32, i32) {
    %c0_i32 = arith.constant 0 : i32
    %c0_i32_0 = arith.constant 0 : i32
    %c0_i32_1 = arith.constant 0 : i32
    return %c0_i32, %c0_i32_0 : i32, i32
  }
  func.func @transform_2(%arg0: i32) -> (i32, i32) {
    %c0_i32 = arith.constant 0 : i32
    %c0_i32_0 = arith.constant 0 : i32
    %c0_i32_1 = arith.constant 0 : i32
    return %c0_i32, %c0_i32_0 : i32, i32
  }
  func.func @transform_3(%arg0: i32) -> (i32, i32) {
    %c0_i32 = arith.constant 0 : i32
    %c0_i32_0 = arith.constant 0 : i32
    %c0_i32_1 = arith.constant 0 : i32
    return %c0_i32, %c0_i32_0 : i32, i32
  }
  func.func @transform_4(%arg0: i32) -> (i32, i32) {
    %c0_i32 = arith.constant 0 : i32
    %c0_i32_0 = arith.constant 0 : i32
    %c0_i32_1 = arith.constant 0 : i32
    return %c0_i32, %c0_i32_0 : i32, i32
  }
  func.func @transform_5(%arg0: i32) -> (i32, i32) {
    %c0_i32 = arith.constant 0 : i32
    %c0_i32_0 = arith.constant 0 : i32
    return %c0_i32, %arg0 : i32, i32
  }
}

</mosaic_0001>

<bundles_post_ra>
// kernel: tpu_custom_call.1
= control target key start
LH: loop header
LB: loop body
LE: loop exit
PB: predicated region body
PF: predicated region fallthrough
CT: control target
= control target key end

     0   :  { %s373_s0 = inlined_call_operand.vmem [shape: f32[16,128], index: 0, kind: input, shape index: {}]   ;;  %s374_s1 = inlined_call_operand.vmem [shape: f32[32,16], index: 1, kind: input, shape index: {}]   ;;  %s375_s2 = inlined_call_operand.vmem [shape: f32[32,1], index: 2, kind: input, shape index: {}]   ;;  %s376_s3 = inlined_call_operand.vmem [shape: f32[32,1], index: 3, kind: input, shape index: {}]   ;;  %s377_s4 = inlined_call_operand.<no memory space> [shape: f32[1,1], index: 4, kind: input, shape index: {}]   ;;  %s378_s5 = inlined_call_operand.hbm [shape: f32[1,128], index: 5, kind: output, shape index: {}]  }
   0x1   :  { %v10_v0 = vstv %s377_s4 }
   0x2   :  { %11 = vst [vmem:[#allocation2] sm:$0x1] %v10_v0 }
   0x3   :  { %v27_v1 = vld [vmem:[%s373_s0] sm:$0xff]  ;;  %v28_v2 = vld [vmem:[%s373_s0 + $0x8] sm:$0xff]  ;;  %vm53_vm0 = vcmask 130048   ;;  %v25_v5 = vld [vmem:[%s374_s1 + $0x10] sm:$0xff]  ;;  %v280_v6 = vmov 0  }
   0x4   :  { %v23_v3 = vld [vmem:[%s374_s1] sm:$0xff]  ;;  %v238_v4 = vpack.c.bf16 %v28_v2, %v27_v1  ;;  %246 = vset.pattern.permute.xlu0 %v280_v6  ;;  %235 = vmatprep.mubr.msk.f32.mxu1 %vm53_vm0, %v25_v5  ;;  %v31_v8 = vld [vmem:[%s375_s2 + $0x10] sm:$0xff]  ;;  %v24_v9 = vld [vmem:[%s374_s1 + $0x8] sm:$0xff] }
   0x5   :  { %232 = vmatprep.mubr.msk.f32.mxu0 %vm53_vm0, %v23_v3  ;;  %v29_v7 = vld [vmem:[%s375_s2] sm:$0xff]  ;;  %247 = vset.pattern.permute.xlu1 %v280_v6  ;;  %v26_v10 = vld [vmem:[%s374_s1 + $0x18] sm:$0xff] }
   0x6   :  { %239 = vmatprep.subr.bf16.mxu0 %v238_v4  ;;  %242 = vmatprep.subr.bf16.mxu1 %v238_v4 }
   0x7   :  { %241 = vmatpush3.bf16.msra.mxu0 %v238_v4  ;;  %243 = vmatpush3.bf16.msra.mxu1 %v238_v4 }
   0x8   :  { %35 = vperm.xlu0 %246, %v29_v7   ;;  %45 = vperm.xlu1 %247, %v31_v8  }
   0x9   :  { %12 = vsyncpa [#allocation4], 0  ;;  %v30_v11 = vld [vmem:[%s375_s2 + $0x8] sm:$0xff]  ;;  %v32_v12 = vld [vmem:[%s375_s2 + $0x18] sm:$0xff]  ;;  %v198_v44 = vlaneseq }
   0xa   :  { %233 = vmatmul.mubr.msk.f32.vlgmr.msra.gmra.mrb[0].mxu0 %vm53_vm0, %v24_v9  ;;  %236 = vmatmul.mubr.msk.f32.vlgmr.msra.gmra.mrb[0].mxu1 %vm53_vm0, %v26_v10  ;;  %v155_v13 = vld [vmem:[%s376_s3] sm:$0xff]  ;;  %v156_v14 = vld [vmem:[%s376_s3 + $0x8] sm:$0xff]  ;;  %v157_v15 = vld [vmem:[%s376_s3 + $0x10] sm:$0xff] }
   0xb   :  { %v158_v16 = vld [vmem:[%s376_s3 + $0x18] sm:$0xff]  ;;  %v192_v17 = vld [vmem:[#allocation2] sm:$0x1]  ;;  %v199_v47 = vshrl.u32 %v198_v44, 7  ;;  %s281_s3 = smov [#allocation3]  }
   0xc   :  { %40 = vperm.xlu0 %246, %v30_v11   ;;  %50 = vperm.xlu1 %247, %v32_v12   ;;  %s210_s19 = sshll.u32 %s281_s3, 4  ;;  %s211_s19 = int_to_ptr.vmem [resolvable:$true] %s210_s19 }
   0xd   :  { %v200_v50 = vsub.s32 0, %v199_v47  ;;  %s256_s20 = scalar_lea.vmem %s211_s19, 16  ;;  %s260_s21 = scalar_lea.vmem %s211_s19, 32 }
   0xe   :  { %p257_p0 = scmp.ne.s32.totalorder %s211_s19, %s256_s20  ;;  %p261_p1 = scmp.lt.s32.totalorder %s211_s19, %s211_s19 }
   0xf   :  { %p262_p2 = scmp.lt.s32.totalorder %s260_s21, %s256_s20 }
  0x10   :  { %161 = vperm.xlu0 %246, %v155_v13   ;;  %166 = vperm.xlu1 %247, %v156_v14  }
  0x11   :  { %p263_p3 = por %p262_p2, %p261_p1 }
  0x13   :  { %p264_p4 = pnand %p263_p3, %p257_p0 }
  0x14   :  { %171 = vperm.xlu0 %246, %v157_v15   ;;  %176 = vperm.xlu1 %247, %v158_v16  }
  0x18   :  { %195 = vperm.xlu0 %246, %v192_v17  }
  0x87   :  { %v36_v18 = vpop.permute.xlu0 %35  ;;  %v46_v19 = vpop.permute.xlu1 %45 }
  0x8b   :  { %v41_v20 = vpop.permute.xlu0 %40  ;;  %v51_v26 = vpop.permute.xlu1 %50 }
  0x8f   :  { %v162_v30 = vpop.permute.xlu0 %161  ;;  %v167_v32 = vpop.permute.xlu1 %166 }
  0x93   :  { %v172_v38 = vpop.permute.xlu0 %171  ;;  %v177_v41 = vpop.permute.xlu1 %176 }
  0x97   :  { %v196_v52 = vpop.permute.xlu0 %195 }
  0x98   :  { %v201_v54 = vrot.slane %v196_v52, %v200_v50 }
  0xdd   :  { %v234_v21 = vpop.f32.mrb[0].mxu0  ;;  %v237_v22 = vpop.f32.mrb[0].mxu1 }
  0xde   :  { %v138_v23 = vadd.f32 %v234_v21, %v41_v20  ;;  %v132_v24 = vpop.f32.mrb[1].mxu0  ;;  %v142_v25 = vpop.f32.mrb[1].mxu1  ;;  %v148_v29 = vadd.f32 %v237_v22, %v51_v26 }
  0xdf   :  { %v133_v27 = vadd.f32 %v132_v24, %v36_v18  ;;  %v143_v28 = vadd.f32 %v142_v25, %v46_v19 }
  0xe0   :  { %248 = vtanh.f32 %v138_v23 }
  0xe1   :  { %250 = vtanh.f32 %v133_v27 }
  0xe2   :  { %252 = vtanh.f32 %v143_v28 }
  0xe3   :  { %254 = vtanh.f32 %v148_v29 }
  0xea   :  { %v249_v31 = vpop.eup %248 }
  0xeb   :  { %v180_v33 = vmul.f32 %v249_v31, %v167_v32  ;;  %v251_v34 = vpop.eup %250 }
  0xec   :  { %v253_v35 = vpop.eup %252  ;;  %v179_v36 = vmul.f32 %v251_v34, %v162_v30 }
  0xed   :  { %v255_v37 = vpop.eup %254  ;;  %v181_v40 = vmul.f32 %v253_v35, %v172_v38 }
  0xee   :  { %v183_v39 = vadd.f32 %v180_v33, %v179_v36  ;;  %v182_v42 = vmul.f32 %v255_v37, %v177_v41 }
  0xf0   :  { %v184_v43 = vadd.f32 %v183_v39, %v181_v40 }
  0xf2   :  { %v185_v45 = vadd.f32 %v184_v43, %v182_v42 }
  0xf4   :  { %v186_v46 = vrot.slane %v185_v45, 4 }
  0xf6   :  { %v187_v48 = vadd.f32 %v186_v46, %v185_v45 }
  0xf8   :  { %v188_v49 = vrot.slane %v187_v48, 2 }
  0xfa   :  { %v189_v51 = vadd.f32 %v188_v49, %v187_v48 }
  0xfc   :  { %v190_v53 = vrot.slane %v189_v51, 1 }
  0xfe   :  { %v191_v55 = vadd.f32 %v190_v53, %v189_v51 }
 0x100   :  { %v202_v56 = vadd.f32 %v201_v54, %v191_v55 }
 0x102   :  { %203 = vst [vmem:[#allocation3] sm:$0x1] %v202_v56 }
 0x103   :  { %267 = shalt.err (!%p264_p4)
}
 0x104   :  { %s268_s24 = scalar_lea.hbm %s378_s5, 16 }
 0x105   :  { %p269_p5 = scmp.ne.s32.totalorder %s378_s5, %s268_s24  ;;  %p272_p6 = scmp.lt.u32.totalorder %s268_s24, %s378_s5 }
 0x107   :  { %p274_p7 = pnand %p272_p6, %p269_p5 }
 0x109   :  { %277 = shalt.err (!%p274_p7)
}
 0x10a   :  { %213 = dma.vmem_to_hbm [thread:$0]  %s211_s19, 16, %s378_s5, [#allocation4]  }
 0x10b   :  { %278 = dma.done.wait [#allocation4], 16  }
 0x10c   :  { %279 = vsyncadd [#allocation4], 4294967280 }
 0x10d   :  { %217 = vsyncpa [#allocation4], 1 }

</bundles_post_ra>
